<compile_context>
chip_gen: v7x
topology: tpu7x:2x2x1
jax: 0.10.0
libtpu: 0.0.40
codegen_flags: <defaults>
</compile_context>

<pallas_src>
import jax
import jax.numpy as jnp
from jax import lax
from jax.experimental import pallas as pl
from jax.experimental.pallas import tpu as pltpu  # noqa: F401  (TPU backend)

LEAKY_SLOPE = 0.01
BN_EPS = 1e-5
ANGULAR_BOUND = 1.5
LINEAR_BOUND = 0.5
HEAD_PAD = 128  # lane-dense padded width of the fused head output


def _bn_lrelu(h, gamma, beta):
    """Training-mode BatchNorm1d folded to one scale/shift + LeakyReLU(0.01).

    Single-pass biased stats: mean = E[h], var = E[h^2] - mean^2 (matches
    PyTorch training-mode BN). rsqrt runs on the (1,F) row (EUP slot); the
    per-element work on the (B,F) tile is mul + add + (mul,max).
    """
    inv_b = 1.0 / h.shape[0]
    mean = jnp.sum(h, axis=0, keepdims=True) * inv_b
    ex2 = jnp.sum(h * h, axis=0, keepdims=True) * inv_b
    var = ex2 - mean * mean
    scale = gamma * lax.rsqrt(var + BN_EPS)          # (1, F)
    shift = beta - mean * scale                      # (1, F)
    hn = h * scale + shift
    return jnp.maximum(hn, LEAKY_SLOPE * hn)         # LeakyReLU


def actor_kernel(x_ref, w1_ref, w2_ref, w3_ref, w4_ref, wmu_ref, vec_ref,
                 out_ref):
    # vec_ref layout (9, 128):
    #   rows 0-3: gamma1, gamma2, gamma3(pad), gamma4(pad)
    #   rows 4-7: beta1,  beta2,  beta3(pad),  beta4(pad)
    #   row  8  : fused head bias [b_angular, b_linear, 0, ...]
    x = x_ref[...].astype(jnp.float32)
    v = vec_ref[...]

    h = jnp.dot(x, w1_ref[...], preferred_element_type=jnp.float32)
    h = _bn_lrelu(h, v[0:1, :], v[4:5, :])

    h = jnp.dot(h, w2_ref[...], preferred_element_type=jnp.float32)
    h = _bn_lrelu(h, v[1:2, :], v[5:6, :])

    h = jnp.dot(h, w3_ref[...], preferred_element_type=jnp.float32)
    h = _bn_lrelu(h, v[2:3, :64], v[6:7, :64])

    h = jnp.dot(h, w4_ref[...], preferred_element_type=jnp.float32)
    h = _bn_lrelu(h, v[3:4, :64], v[7:8, :64])

    # Fused, lane-padded heads: column 0 = angular, column 1 = linear,
    # columns 2..127 are zero weights (discarded by the wrapper slice).
    z = jnp.dot(h, wmu_ref[...], preferred_element_type=jnp.float32) + v[8:9, :]

    # Single transcendental for both heads: sigmoid(z) = 0.5*tanh(0.5*z)+0.5
    #   angular = 1.5 * tanh(z)
    #   linear  = 0.5 * sigmoid(z) = 0.25*tanh(0.5*z) + 0.25
    col = lax.broadcasted_iota(jnp.int32, z.shape, 1)
    is_ang = col == 0
    t = jnp.tanh(jnp.where(is_ang, z, 0.5 * z))
    out_ref[...] = jnp.where(
        is_ang,
        ANGULAR_BOUND * t,
        (0.5 * LINEAR_BOUND) * t + 0.5 * LINEAR_BOUND,
    )


def actor_forward(state, packed_params):
    """state: (B, state_size) float32.  Returns (B, 2) float32 actions."""
    B = state.shape[0]
    w1, w2, w3, w4, wmu, vec = packed_params
    args = (state, w1, w2, w3, w4, wmu, vec)
    full_spec = lambda a: pl.BlockSpec(a.shape, lambda: (0,) * a.ndim)
    out = pl.pallas_call(
        actor_kernel,
        out_shape=jax.ShapeDtypeStruct((B, HEAD_PAD), jnp.float32),
        in_specs=[full_spec(a) for a in args],
        out_specs=pl.BlockSpec((B, HEAD_PAD), lambda: (0, 0)),
    )(*args)
    return out[:, :2]


def init_params(key, state_size):
    """Synthetic params mirroring the PyTorch module's shapes (PyTorch layout
    with all biases; gamma/beta randomized slightly so the BN affine path is
    actually exercised)."""
    ks = jax.random.split(key, 16)

    def kaiming(k, fi, fo):
        return jax.random.normal(k, (fi, fo), jnp.float32) * jnp.sqrt(2.0 / fi)

    def xavier(k, fi, fo):
        return jax.random.normal(k, (fi, fo), jnp.float32) * jnp.sqrt(2.0 / (fi + fo))

    def bias(k, n):
        return jax.random.uniform(k, (1, n), jnp.float32, -0.1, 0.1)

    def gamma(k, n):
        return 1.0 + 0.1 * jax.random.normal(k, (1, n), jnp.float32)

    def beta(k, n):
        return 0.1 * jax.random.normal(k, (1, n), jnp.float32)

    return dict(
        w1=kaiming(ks[0], state_size, 128), b1=bias(ks[1], 128),
        w2=kaiming(ks[2], 128, 128),        b2=bias(ks[3], 128),
        w3=kaiming(ks[4], 128, 64),         b3=bias(ks[5], 64),
        w4=kaiming(ks[6], 64, 64),          b4=bias(ks[7], 64),
        g1=gamma(ks[8], 128),  be1=beta(ks[9], 128),
        g2=gamma(ks[10], 128), be2=beta(ks[11], 128),
        g3=gamma(ks[12], 64),  be3=beta(ks[13], 64),
        g4=gamma(ks[14], 64),  be4=beta(ks[15], 64),
        w_ang=xavier(ks[0], 64, 1), b_ang=bias(ks[1], 1),
        w_lin=xavier(ks[2], 64, 1), b_lin=bias(ks[3], 1),
    )


def pack_params(p):
    """Convert PyTorch-layout params into the kernel's packed operands.

    fc1..fc4 biases are intentionally dropped: a Linear bias followed by
    training-mode BatchNorm cancels exactly in (h - mean(h)).
    """
    def pad(v):
        return jnp.pad(v, ((0, 0), (0, HEAD_PAD - v.shape[1])))

    head_b = jnp.concatenate([p["b_ang"], p["b_lin"]], axis=1)     # (1, 2)
    vec = jnp.concatenate(
        [p["g1"], p["g2"], pad(p["g3"]), pad(p["g4"]),
         p["be1"], p["be2"], pad(p["be3"]), pad(p["be4"]),
         pad(head_b)],
        axis=0,
    )                                                              # (9, 128)
    wmu = pad(jnp.concatenate([p["w_ang"], p["w_lin"]], axis=1))   # (64, 128)
    return (p["w1"], p["w2"], p["w3"], p["w4"], wmu, vec)


def actor_forward_ref(state, p):
    """Pure-JAX reference matching the PyTorch forward (biases included)."""
    def bn_lrelu(h, g, be):
        m = jnp.mean(h, axis=0, keepdims=True)
        v = jnp.mean((h - m) ** 2, axis=0, keepdims=True)
        hn = (h - m) / jnp.sqrt(v + BN_EPS) * g + be
        return jnp.where(hn >= 0, hn, LEAKY_SLOPE * hn)

    h = bn_lrelu(state @ p["w1"] + p["b1"], p["g1"], p["be1"])
    h = bn_lrelu(h @ p["w2"] + p["b2"], p["g2"], p["be2"])
    h = bn_lrelu(h @ p["w3"] + p["b3"], p["g3"], p["be3"])
    h = bn_lrelu(h @ p["w4"] + p["b4"], p["g4"], p["be4"])
    angular = jnp.tanh(h @ p["w_ang"] + p["b_ang"]) * ANGULAR_BOUND
    linear = jax.nn.sigmoid(h @ p["w_lin"] + p["b_lin"]) * LINEAR_BOUND
    return jnp.concatenate([angular, linear], axis=1)


if __name__ == "__main__":
    key = jax.random.PRNGKey(0)
    k_x, k_p = jax.random.split(key)

    B = 8            # batch (BatchNorm1d training mode needs B > 1)
    STATE_SIZE = 16  # small state vector

    state = jax.random.normal(k_x, (B, STATE_SIZE), jnp.float32)
    params = init_params(k_p, STATE_SIZE)
    packed = pack_params(params)

    out = actor_forward(state, packed)
    out = jax.block_until_ready(out)

    ref = actor_forward_ref(state, params)
    assert out.shape == (B, 2)
    # Tolerance covers last-ulp rounding differences from the mathematically
    # exact bias elimination and the one-pass variance formulation.
    assert jnp.allclose(out, ref, atol=1e-4, rtol=1e-4), (out, ref)

    print("KERNEL_OK")
</pallas_src>

<mosaic_0001>
module attributes {stable_mosaic.version = 11 : i64} {
  func.func @actor_kernel(%arg0: memref<8x16xf32, #tpu.memory_space<vmem>>, %arg1: memref<16x128xf32, #tpu.memory_space<vmem>>, %arg2: memref<128x128xf32, #tpu.memory_space<vmem>>, %arg3: memref<128x64xf32, #tpu.memory_space<vmem>>, %arg4: memref<64x64xf32, #tpu.memory_space<vmem>>, %arg5: memref<64x128xf32, #tpu.memory_space<vmem>>, %arg6: memref<9x128xf32, #tpu.memory_space<vmem>>, %arg7: memref<8x128xf32, #tpu.memory_space<vmem>>) attributes {dimension_semantics = [], scalar_prefetch = 0 : i64, scratch_operands = 0 : i64, tpu.core_type = #tpu.core_type<tc>} {
    %c0 = arith.constant 0 : index
    %c0_0 = arith.constant 0 : index
    %0 = vector.load %arg0[%c0, %c0_0] : memref<8x16xf32, #tpu.memory_space<vmem>>, vector<8x16xf32>
    %c0_1 = arith.constant 0 : index
    %c0_2 = arith.constant 0 : index
    %1 = vector.load %arg6[%c0_1, %c0_2] : memref<9x128xf32, #tpu.memory_space<vmem>>, vector<9x128xf32>
    %c0_3 = arith.constant 0 : index
    %c0_4 = arith.constant 0 : index
    %2 = vector.load %arg1[%c0_3, %c0_4] : memref<16x128xf32, #tpu.memory_space<vmem>>, vector<16x128xf32>
    %cst = arith.constant dense<0.000000e+00> : vector<8x128xf32>
    %3 = tpu.matmul %0, %2, %cst {dimension_numbers = #tpu.dot_dimension_numbers<[1], [0], [0], [1], [0, 0, 1, 1], [], []>} : vector<8x16xf32>, vector<16x128xf32>, vector<8x128xf32> -> vector<8x128xf32>
    %4 = vector.extract_strided_slice %1 {offsets = [0, 0], sizes = [1, 128], strides = [1, 1]} : vector<9x128xf32> to vector<1x128xf32>
    %5 = vector.extract_strided_slice %1 {offsets = [4, 0], sizes = [1, 128], strides = [1, 1]} : vector<9x128xf32> to vector<1x128xf32>
    %cst_5 = arith.constant dense<0.000000e+00> : vector<128xf32>
    %6 = vector.multi_reduction <add>, %3, %cst_5 [0] : vector<8x128xf32> to vector<128xf32>
    %7 = vector.shape_cast %6 : vector<128xf32> to vector<1x128xf32>
    %cst_6 = arith.constant 1.250000e-01 : f32
    %8 = vector.broadcast %cst_6 : f32 to vector<1x128xf32>
    %9 = arith.mulf %7, %8 : vector<1x128xf32>
    %10 = arith.mulf %3, %3 : vector<8x128xf32>
    %cst_7 = arith.constant dense<0.000000e+00> : vector<128xf32>
    %11 = vector.multi_reduction <add>, %10, %cst_7 [0] : vector<8x128xf32> to vector<128xf32>
    %12 = vector.shape_cast %11 : vector<128xf32> to vector<1x128xf32>
    %cst_8 = arith.constant 1.250000e-01 : f32
    %13 = vector.broadcast %cst_8 : f32 to vector<1x128xf32>
    %14 = arith.mulf %12, %13 : vector<1x128xf32>
    %15 = arith.mulf %9, %9 : vector<1x128xf32>
    %16 = arith.subf %14, %15 : vector<1x128xf32>
    %cst_9 = arith.constant 9.99999974E-6 : f32
    %17 = vector.broadcast %cst_9 : f32 to vector<1x128xf32>
    %18 = arith.addf %16, %17 : vector<1x128xf32>
    %19 = math.rsqrt %18 : vector<1x128xf32>
    %20 = arith.mulf %4, %19 : vector<1x128xf32>
    %21 = arith.mulf %9, %20 : vector<1x128xf32>
    %22 = arith.subf %5, %21 : vector<1x128xf32>
    %23 = vector.broadcast %20 : vector<1x128xf32> to vector<8x128xf32>
    %24 = arith.mulf %3, %23 : vector<8x128xf32>
    %25 = vector.broadcast %22 : vector<1x128xf32> to vector<8x128xf32>
    %26 = arith.addf %24, %25 : vector<8x128xf32>
    %cst_10 = arith.constant 0.00999999977 : f32
    %27 = vector.broadcast %cst_10 : f32 to vector<8x128xf32>
    %28 = arith.mulf %27, %26 : vector<8x128xf32>
    %29 = arith.maximumf %26, %28 : vector<8x128xf32>
    %c0_11 = arith.constant 0 : index
    %c0_12 = arith.constant 0 : index
    %30 = vector.load %arg2[%c0_11, %c0_12] : memref<128x128xf32, #tpu.memory_space<vmem>>, vector<128x128xf32>
    %cst_13 = arith.constant dense<0.000000e+00> : vector<8x128xf32>
    %31 = tpu.matmul %29, %30, %cst_13 {dimension_numbers = #tpu.dot_dimension_numbers<[1], [0], [0], [1], [0, 0, 1, 1], [], []>} : vector<8x128xf32>, vector<128x128xf32>, vector<8x128xf32> -> vector<8x128xf32>
    %32 = vector.extract_strided_slice %1 {offsets = [1, 0], sizes = [1, 128], strides = [1, 1]} : vector<9x128xf32> to vector<1x128xf32>
    %33 = vector.extract_strided_slice %1 {offsets = [5, 0], sizes = [1, 128], strides = [1, 1]} : vector<9x128xf32> to vector<1x128xf32>
    %cst_14 = arith.constant dense<0.000000e+00> : vector<128xf32>
    %34 = vector.multi_reduction <add>, %31, %cst_14 [0] : vector<8x128xf32> to vector<128xf32>
    %35 = vector.shape_cast %34 : vector<128xf32> to vector<1x128xf32>
    %cst_15 = arith.constant 1.250000e-01 : f32
    %36 = vector.broadcast %cst_15 : f32 to vector<1x128xf32>
    %37 = arith.mulf %35, %36 : vector<1x128xf32>
    %38 = arith.mulf %31, %31 : vector<8x128xf32>
    %cst_16 = arith.constant dense<0.000000e+00> : vector<128xf32>
    %39 = vector.multi_reduction <add>, %38, %cst_16 [0] : vector<8x128xf32> to vector<128xf32>
    %40 = vector.shape_cast %39 : vector<128xf32> to vector<1x128xf32>
    %cst_17 = arith.constant 1.250000e-01 : f32
    %41 = vector.broadcast %cst_17 : f32 to vector<1x128xf32>
    %42 = arith.mulf %40, %41 : vector<1x128xf32>
    %43 = arith.mulf %37, %37 : vector<1x128xf32>
    %44 = arith.subf %42, %43 : vector<1x128xf32>
    %cst_18 = arith.constant 9.99999974E-6 : f32
    %45 = vector.broadcast %cst_18 : f32 to vector<1x128xf32>
    %46 = arith.addf %44, %45 : vector<1x128xf32>
    %47 = math.rsqrt %46 : vector<1x128xf32>
    %48 = arith.mulf %32, %47 : vector<1x128xf32>
    %49 = arith.mulf %37, %48 : vector<1x128xf32>
    %50 = arith.subf %33, %49 : vector<1x128xf32>
    %51 = vector.broadcast %48 : vector<1x128xf32> to vector<8x128xf32>
    %52 = arith.mulf %31, %51 : vector<8x128xf32>
    %53 = vector.broadcast %50 : vector<1x128xf32> to vector<8x128xf32>
    %54 = arith.addf %52, %53 : vector<8x128xf32>
    %cst_19 = arith.constant 0.00999999977 : f32
    %55 = vector.broadcast %cst_19 : f32 to vector<8x128xf32>
    %56 = arith.mulf %55, %54 : vector<8x128xf32>
    %57 = arith.maximumf %54, %56 : vector<8x128xf32>
    %c0_20 = arith.constant 0 : index
    %c0_21 = arith.constant 0 : index
    %58 = vector.load %arg3[%c0_20, %c0_21] : memref<128x64xf32, #tpu.memory_space<vmem>>, vector<128x64xf32>
    %cst_22 = arith.constant dense<0.000000e+00> : vector<8x64xf32>
    %59 = tpu.matmul %57, %58, %cst_22 {dimension_numbers = #tpu.dot_dimension_numbers<[1], [0], [0], [1], [0, 0, 1, 1], [], []>} : vector<8x128xf32>, vector<128x64xf32>, vector<8x64xf32> -> vector<8x64xf32>
    %60 = vector.extract_strided_slice %1 {offsets = [2, 0], sizes = [1, 64], strides = [1, 1]} : vector<9x128xf32> to vector<1x64xf32>
    %61 = vector.extract_strided_slice %1 {offsets = [6, 0], sizes = [1, 64], strides = [1, 1]} : vector<9x128xf32> to vector<1x64xf32>
    %cst_23 = arith.constant dense<0.000000e+00> : vector<64xf32>
    %62 = vector.multi_reduction <add>, %59, %cst_23 [0] : vector<8x64xf32> to vector<64xf32>
    %63 = vector.shape_cast %62 : vector<64xf32> to vector<1x64xf32>
    %cst_24 = arith.constant 1.250000e-01 : f32
    %64 = vector.broadcast %cst_24 : f32 to vector<1x64xf32>
    %65 = arith.mulf %63, %64 : vector<1x64xf32>
    %66 = arith.mulf %59, %59 : vector<8x64xf32>
    %cst_25 = arith.constant dense<0.000000e+00> : vector<64xf32>
    %67 = vector.multi_reduction <add>, %66, %cst_25 [0] : vector<8x64xf32> to vector<64xf32>
    %68 = vector.shape_cast %67 : vector<64xf32> to vector<1x64xf32>
    %cst_26 = arith.constant 1.250000e-01 : f32
    %69 = vector.broadcast %cst_26 : f32 to vector<1x64xf32>
    %70 = arith.mulf %68, %69 : vector<1x64xf32>
    %71 = arith.mulf %65, %65 : vector<1x64xf32>
    %72 = arith.subf %70, %71 : vector<1x64xf32>
    %cst_27 = arith.constant 9.99999974E-6 : f32
    %73 = vector.broadcast %cst_27 : f32 to vector<1x64xf32>
    %74 = arith.addf %72, %73 : vector<1x64xf32>
    %75 = math.rsqrt %74 : vector<1x64xf32>
    %76 = arith.mulf %60, %75 : vector<1x64xf32>
    %77 = arith.mulf %65, %76 : vector<1x64xf32>
    %78 = arith.subf %61, %77 : vector<1x64xf32>
    %79 = vector.broadcast %76 : vector<1x64xf32> to vector<8x64xf32>
    %80 = arith.mulf %59, %79 : vector<8x64xf32>
    %81 = vector.broadcast %78 : vector<1x64xf32> to vector<8x64xf32>
    %82 = arith.addf %80, %81 : vector<8x64xf32>
    %cst_28 = arith.constant 0.00999999977 : f32
    %83 = vector.broadcast %cst_28 : f32 to vector<8x64xf32>
    %84 = arith.mulf %83, %82 : vector<8x64xf32>
    %85 = arith.maximumf %82, %84 : vector<8x64xf32>
    %c0_29 = arith.constant 0 : index
    %c0_30 = arith.constant 0 : index
    %86 = vector.load %arg4[%c0_29, %c0_30] : memref<64x64xf32, #tpu.memory_space<vmem>>, vector<64x64xf32>
    %cst_31 = arith.constant dense<0.000000e+00> : vector<8x64xf32>
    %87 = tpu.matmul %85, %86, %cst_31 {dimension_numbers = #tpu.dot_dimension_numbers<[1], [0], [0], [1], [0, 0, 1, 1], [], []>} : vector<8x64xf32>, vector<64x64xf32>, vector<8x64xf32> -> vector<8x64xf32>
    %88 = vector.extract_strided_slice %1 {offsets = [3, 0], sizes = [1, 64], strides = [1, 1]} : vector<9x128xf32> to vector<1x64xf32>
    %89 = vector.extract_strided_slice %1 {offsets = [7, 0], sizes = [1, 64], strides = [1, 1]} : vector<9x128xf32> to vector<1x64xf32>
    %cst_32 = arith.constant dense<0.000000e+00> : vector<64xf32>
    %90 = vector.multi_reduction <add>, %87, %cst_32 [0] : vector<8x64xf32> to vector<64xf32>
    %91 = vector.shape_cast %90 : vector<64xf32> to vector<1x64xf32>
    %cst_33 = arith.constant 1.250000e-01 : f32
    %92 = vector.broadcast %cst_33 : f32 to vector<1x64xf32>
    %93 = arith.mulf %91, %92 : vector<1x64xf32>
    %94 = arith.mulf %87, %87 : vector<8x64xf32>
    %cst_34 = arith.constant dense<0.000000e+00> : vector<64xf32>
    %95 = vector.multi_reduction <add>, %94, %cst_34 [0] : vector<8x64xf32> to vector<64xf32>
    %96 = vector.shape_cast %95 : vector<64xf32> to vector<1x64xf32>
    %cst_35 = arith.constant 1.250000e-01 : f32
    %97 = vector.broadcast %cst_35 : f32 to vector<1x64xf32>
    %98 = arith.mulf %96, %97 : vector<1x64xf32>
    %99 = arith.mulf %93, %93 : vector<1x64xf32>
    %100 = arith.subf %98, %99 : vector<1x64xf32>
    %cst_36 = arith.constant 9.99999974E-6 : f32
    %101 = vector.broadcast %cst_36 : f32 to vector<1x64xf32>
    %102 = arith.addf %100, %101 : vector<1x64xf32>
    %103 = math.rsqrt %102 : vector<1x64xf32>
    %104 = arith.mulf %88, %103 : vector<1x64xf32>
    %105 = arith.mulf %93, %104 : vector<1x64xf32>
    %106 = arith.subf %89, %105 : vector<1x64xf32>
    %107 = vector.broadcast %104 : vector<1x64xf32> to vector<8x64xf32>
    %108 = arith.mulf %87, %107 : vector<8x64xf32>
    %109 = vector.broadcast %106 : vector<1x64xf32> to vector<8x64xf32>
    %110 = arith.addf %108, %109 : vector<8x64xf32>
    %cst_37 = arith.constant 0.00999999977 : f32
    %111 = vector.broadcast %cst_37 : f32 to vector<8x64xf32>
    %112 = arith.mulf %111, %110 : vector<8x64xf32>
    %113 = arith.maximumf %110, %112 : vector<8x64xf32>
    %c0_38 = arith.constant 0 : index
    %c0_39 = arith.constant 0 : index
    %114 = vector.load %arg5[%c0_38, %c0_39] : memref<64x128xf32, #tpu.memory_space<vmem>>, vector<64x128xf32>
    %cst_40 = arith.constant dense<0.000000e+00> : vector<8x128xf32>
    %115 = tpu.matmul %113, %114, %cst_40 {dimension_numbers = #tpu.dot_dimension_numbers<[1], [0], [0], [1], [0, 0, 1, 1], [], []>} : vector<8x64xf32>, vector<64x128xf32>, vector<8x128xf32> -> vector<8x128xf32>
    %116 = vector.extract_strided_slice %1 {offsets = [8, 0], sizes = [1, 128], strides = [1, 1]} : vector<9x128xf32> to vector<1x128xf32>
    %117 = vector.broadcast %116 : vector<1x128xf32> to vector<8x128xf32>
    %118 = arith.addf %115, %117 : vector<8x128xf32>
    %119 = tpu.iota {dimensions = array<i32: 1>} : vector<8x128xi32>
    %c0_i32 = arith.constant 0 : i32
    %120 = vector.broadcast %c0_i32 : i32 to vector<8x128xi32>
    %121 = arith.cmpi eq, %119, %120 : vector<8x128xi32>
    %cst_41 = arith.constant 5.000000e-01 : f32
    %122 = vector.broadcast %cst_41 : f32 to vector<8x128xf32>
    %123 = arith.mulf %122, %118 : vector<8x128xf32>
    %124 = arith.select %121, %118, %123 : vector<8x128xi1>, vector<8x128xf32>
    %125 = math.tanh %124 : vector<8x128xf32>
    %cst_42 = arith.constant 1.500000e+00 : f32
    %126 = vector.broadcast %cst_42 : f32 to vector<8x128xf32>
    %127 = arith.mulf %126, %125 : vector<8x128xf32>
    %cst_43 = arith.constant 2.500000e-01 : f32
    %128 = vector.broadcast %cst_43 : f32 to vector<8x128xf32>
    %129 = arith.mulf %128, %125 : vector<8x128xf32>
    %cst_44 = arith.constant 2.500000e-01 : f32
    %130 = vector.broadcast %cst_44 : f32 to vector<8x128xf32>
    %131 = arith.addf %129, %130 : vector<8x128xf32>
    %132 = arith.select %121, %127, %131 : vector<8x128xi1>, vector<8x128xf32>
    %c0_45 = arith.constant 0 : index
    %c0_46 = arith.constant 0 : index
    %133 = vector.load %arg7[%c0_45, %c0_46] : memref<8x128xf32, #tpu.memory_space<vmem>>, vector<8x128xf32>
    tpu.vector_store %arg7[%c0_45, %c0_46], %132 {strides = array<i32>} : memref<8x128xf32, #tpu.memory_space<vmem>>, vector<8x128xf32>,
    return
  }
}

</mosaic_0001>

<bundles_post_ra>
// kernel: tpu_custom_call.1
= control target key start
LH: loop header
LB: loop body
LE: loop exit
PB: predicated region body
PF: predicated region fallthrough
CT: control target
= control target key end

     0   :  { %12 = vsyncpa [#allocation3], 0  ;;  %s1317_s0 = inlined_call_operand.hbm [shape: f32[8,16], index: 0, kind: input, shape index: {}]   ;;  %s1318_s1 = inlined_call_operand.hbm [shape: f32[16,128], index: 1, kind: input, shape index: {}]   ;;  %s1319_s2 = inlined_call_operand.vmem [shape: f32[128,128], index: 2, kind: input, shape index: {}]   ;;  %s1320_s3 = inlined_call_operand.vmem [shape: f32[128,64], index: 3, kind: input, shape index: {}]   ;;  %s1321_s4 = inlined_call_operand.vmem [shape: f32[64,64], index: 4, kind: input, shape index: {}]   ;;  %s1322_s5 = inlined_call_operand.hbm [shape: f32[64,128], index: 5, kind: input, shape index: {}]   ;;  %s1323_s6 = inlined_call_operand.vmem [shape: f32[9,128], index: 6, kind: input, shape index: {}]   ;;  %s1324_s7 = inlined_call_operand.hbm [shape: f32[8,128], index: 7, kind: output, shape index: {}]  }
   0x1   :  { %13 = vsyncpa [#allocation6], 0 }
   0x2   :  { %14 = vsyncpa [#allocation4], 0  ;;  %s1025_s24 = smov [#allocation5]   ;;  %s931_s28 = scalar_lea.hbm %s1318_s1, 256 }
   0x3   :  { %s30_s25 = sshll.u32 %s1025_s24, 4  ;;  %p932_p0 = scmp.ne.s32.totalorder %s1318_s1, %s931_s28  ;;  %s31_s25 = int_to_ptr.vmem [resolvable:$true] %s30_s25 }
   0x4   :  { %p935_p1 = scmp.lt.u32.totalorder %s931_s28, %s1318_s1 }
   0x6   :  { %p937_p2 = pnand %p935_p1, %p932_p0 }
   0x8   :  { %940 = shalt.err (!%p937_p2)
}
   0x9   :  { %s941_s10 = scalar_lea.vmem %s31_s25, 256  ;;  %p946_p4 = scmp.lt.s32.totalorder %s31_s25, %s31_s25 }
   0xa   :  { %p942_p3 = scmp.ne.s32.totalorder %s31_s25, %s941_s10  ;;  %p947_p5 = scmp.lt.s32.totalorder %s941_s10, %s941_s10 }
   0xc   :  { %p948_p6 = por %p947_p5, %p946_p4 }
   0xe   :  { %p949_p7 = pnand %p948_p6, %p942_p3 }
  0x10   :  { %952 = shalt.err (!%p949_p7)
}
  0x11   :  { %s1026_s11 = smov 128   ;;  %s1027_s12 = smov 8  }
  0x12   :  { %36 = dma.hbm_to_vmem [thread:$0]  %s1318_s1, 256, %s31_s25, [#allocation6], %s1026_s11, %s1026_s11, %s1027_s12  }
  0x13   :  { %s1028_s15 = smov [#allocation2]   ;;  %s1029_s17 = smov [#allocation7]  }
  0x14   :  { %s21_s16 = sshll.u32 %s1028_s15, 4  ;;  %s48_s18 = sshll.u32 %s1029_s17, 4  ;;  %s22_s16 = int_to_ptr.vmem [resolvable:$true] %s21_s16  ;;  %s49_s18 = int_to_ptr.vmem [resolvable:$true] %s48_s18 }
  0x15   :  { %s953_s21 = scalar_lea.hbm %s1317_s0, 128 }
  0x16   :  { %p954_p8 = scmp.ne.s32.totalorder %s1317_s0, %s953_s21  ;;  %p957_p9 = scmp.lt.u32.totalorder %s953_s21, %s1317_s0 }
  0x18   :  { %p959_p10 = pnand %p957_p9, %p954_p8 }
  0x1a   :  { %962 = shalt.err (!%p959_p10)
}
  0x1b   :  { %s963_s1 = scalar_lea.vmem %s22_s16, 128  ;;  %p968_p12 = scmp.lt.s32.totalorder %s22_s16, %s22_s16 }
  0x1c   :  { %p964_p11 = scmp.ne.s32.totalorder %s22_s16, %s963_s1  ;;  %p969_p13 = scmp.lt.s32.totalorder %s963_s1, %s963_s1 }
  0x1e   :  { %p970_p0 = por %p969_p13, %p968_p12 }
  0x20   :  { %p971_p1 = pnand %p970_p0, %p964_p11 }
  0x22   :  { %974 = shalt.err (!%p971_p1)
}
  0x23   :  { %24 = dma.hbm_to_vmem [thread:$0]  %s1317_s0, 128, %s22_s16, [#allocation3]  }
  0x24   :  { %s975_s30 = scalar_lea.hbm %s1322_s5, 1024 }
  0x25   :  { %p976_p2 = scmp.ne.s32.totalorder %s1322_s5, %s975_s30  ;;  %p979_p3 = scmp.lt.u32.totalorder %s975_s30, %s1322_s5 }
  0x27   :  { %p981_p4 = pnand %p979_p3, %p976_p2 }
  0x29   :  { %984 = shalt.err (!%p981_p4)
}
  0x2a   :  { %s985_s14 = scalar_lea.vmem %s49_s18, 1024  ;;  %p990_p6 = scmp.lt.s32.totalorder %s49_s18, %s49_s18 }
  0x2b   :  { %p986_p5 = scmp.ne.s32.totalorder %s49_s18, %s985_s14  ;;  %p991_p7 = scmp.lt.s32.totalorder %s985_s14, %s985_s14 }
  0x2d   :  { %p992_p8 = por %p991_p7, %p990_p6 }
  0x2f   :  { %p993_p9 = pnand %p992_p8, %p986_p5 }
  0x31   :  { %996 = shalt.err (!%p993_p9)
}
  0x32   :  { %54 = dma.hbm_to_vmem [thread:$0]  %s1322_s5, 1024, %s49_s18, [#allocation6], %s1026_s11, %s1026_s11, %s1027_s12  }
  0x33   :  { %1019 = dma.done.wait [#allocation3], 128  }
  0x34   :  { %1020 = vsyncadd [#allocation3], 4294967168 }
  0x35   :  { %1021 = dma.done.wait [#allocation6], 1280  }
  0x36   :  { %1022 = vsyncadd [#allocation6], 4294966016  ;;  %v1030_v0 = vmov 0.0|0.0   ;;  %vm1031_vm0 = vmmov 0   ;;  %v1032_v1 = vmov 0.0   ;;  %v69_v2 = vld [vmem:[#allocation5] sm:$0xff]  ;;  %v170_v50 = vlaneseq }
  0x37   :  { %837 = vmatprep.subr.bf16.mxu0 %v1030_v0  ;;  %726 = vmatprep.mubr.msk.f32.mxu0 %vm1031_vm0, %v1032_v1  ;;  %v70_v3 = vld [vmem:[#allocation5 + $0x8] sm:$0xff]  ;;  %v66_v5 = vld [vmem:[#allocation2] sm:$0xff]  ;;  %vm71_vm1 = vcmask 130048   ;;  %v183_v7 = vld [vmem:[%s1319_s2 + $0x8] sm:$0xff]  ;;  %vm391_vm2 = vcmask 523264   ;;  %s1033_s12 = smov [#allocation8]  }
  0x38   :  { %840 = vmatprep.subr.bf16.mxu1 %v1030_v0  ;;  %761 = vmatprep.mubr.msk.f32.mxu1 %vm1031_vm0, %v1032_v1  ;;  %v838_v4 = vpack.c.bf16 %v70_v3, %v69_v2  ;;  %v182_v6 = vld [vmem:[%s1319_s2] sm:$0xff]  ;;  %v184_v9 = vld [vmem:[%s1319_s2 + $0x10] sm:$0xff]  ;;  %v185_v10 = vld [vmem:[%s1319_s2 + $0x18] sm:$0xff]  ;;  %v1182_v51 = vshrl.u32 %v170_v50, 7  ;;  %s653_s16 = sshll.u32 %s1033_s12, 4  ;;  %s654_s16 = int_to_ptr.vmem [resolvable:$true] %s653_s16 }
  0x39   :  { %v841_v8 = vpack.c.bf16 %v183_v7, %v182_v6  ;;  %v844_v11 = vpack.c.bf16 %v185_v10, %v184_v9  ;;  %v186_v12 = vld [vmem:[%s1319_s2 + $0x20] sm:$0xff]  ;;  %v187_v13 = vld [vmem:[%s1319_s2 + $0x28] sm:$0xff]  ;;  %v188_v15 = vld [vmem:[%s1319_s2 + $0x30] sm:$0xff]  ;;  %s997_s17 = scalar_lea.vmem %s654_s16, 128  ;;  %p1002_p11 = scmp.lt.s32.totalorder %s654_s16, %s654_s16 }
  0x3a   :  { %839 = vmatpush3.bf16.msra.mxu0 %v838_v4  ;;  %v847_v14 = vpack.c.bf16 %v187_v13, %v186_v12  ;;  %v189_v16 = vld [vmem:[%s1319_s2 + $0x38] sm:$0xff]  ;;  %v190_v18 = vld [vmem:[%s1319_s2 + $0x40] sm:$0xff]  ;;  %v191_v19 = vld [vmem:[%s1319_s2 + $0x48] sm:$0xff]  ;;  %v172_v55 = vsub.s32 0, %v1182_v51  ;;  %v177_v59 = vsub.s32 4, %v1182_v51  ;;  %p998_p10 = scmp.ne.s32.totalorder %s654_s16, %s997_s17  ;;  %p1003_p12 = scmp.lt.s32.totalorder %s997_s17, %s997_s17 }
  0x3b   :  { %864 = vmatprep.subr.bf16.mxu0 %v1030_v0  ;;  %842 = vmatpush3.bf16.msra.mxu1 %v841_v8  ;;  %v850_v17 = vpack.c.bf16 %v189_v16, %v188_v15  ;;  %v853_v20 = vpack.c.bf16 %v191_v19, %v190_v18  ;;  %v192_v21 = vld [vmem:[%s1319_s2 + $0x50] sm:$0xff]  ;;  %v193_v22 = vld [vmem:[%s1319_s2 + $0x58] sm:$0xff]  ;;  %v194_v24 = vld [vmem:[%s1319_s2 + $0x60] sm:$0xff] }
  0x3c   :  { %843 = vmatprep.subr.bf16.mxu1 %v1030_v0  ;;  %v856_v23 = vpack.c.bf16 %v193_v22, %v192_v21  ;;  %v195_v25 = vld [vmem:[%s1319_s2 + $0x68] sm:$0xff]  ;;  %v196_v27 = vld [vmem:[%s1319_s2 + $0x70] sm:$0xff]  ;;  %v197_v28 = vld [vmem:[%s1319_s2 + $0x78] sm:$0xff]  ;;  %p1004_p13 = por %p1003_p12, %p1002_p11 }
  0x3d   :  { %727 = vmatmul.mubr.msk.f32.vlgmr.msra.gmra.mrb[0].mxu0 %vm71_vm1, %v66_v5  ;;  %v859_v26 = vpack.c.bf16 %v195_v25, %v194_v24  ;;  %v862_v29 = vpack.c.bf16 %v197_v28, %v196_v27  ;;  %v1187_v52 = vld [vmem:[%s1323_s6] sm:$0xff]  ;;  %v306_v5 = vld [vmem:[%s1320_s3 + $0x8] sm:$0xff]  ;;  %v307_v7 = vld [vmem:[%s1320_s3 + $0x10] sm:$0xff] }
  0x3e   :  { %796 = vmatprep.mubr.msk.f32.mxu0 %vm1031_vm0, %v1032_v1  ;;  %v305_v4 = vld [vmem:[%s1320_s3] sm:$0xff]  ;;  %v308_v8 = vld [vmem:[%s1320_s3 + $0x18] sm:$0xff]  ;;  %v311_v13 = vld [vmem:[%s1320_s3 + $0x30] sm:$0xff]  ;;  %p1005_p0 = pnand %p1004_p13, %p998_p10 }
  0x3f   :  { %845 = vmatpush3.bf16.msra.mxu1 %v844_v11  ;;  %v865_v6 = vpack.c.bf16 %v306_v5, %v305_v4  ;;  %v868_v9 = vpack.c.bf16 %v308_v8, %v307_v7  ;;  %v309_v10 = vld [vmem:[%s1320_s3 + $0x20] sm:$0xff]  ;;  %v310_v11 = vld [vmem:[%s1320_s3 + $0x28] sm:$0xff]  ;;  %v315_v19 = vld [vmem:[%s1320_s3 + $0x50] sm:$0xff] }
  0x40   :  { %846 = vmatprep.subr.bf16.mxu1 %v1030_v0  ;;  %v871_v12 = vpack.c.bf16 %v310_v11, %v309_v10  ;;  %v313_v16 = vld [vmem:[%s1320_s3 + $0x40] sm:$0xff]  ;;  %v319_v25 = vld [vmem:[%s1320_s3 + $0x70] sm:$0xff]  ;;  %v436_v8 = vld [vmem:[%s1321_s4 + $0x28] sm:$0xff] }
  0x41   :  { %866 = vmatpush3.bf16.msra.mxu0 %v865_v6  ;;  %v317_v22 = vld [vmem:[%s1320_s3 + $0x60] sm:$0xff]  ;;  %v433_v5 = vld [vmem:[%s1321_s4 + $0x10] sm:$0xff]  ;;  %v438_v11 = vld [vmem:[%s1321_s4 + $0x38] sm:$0xff] }
  0x42   :  { %867 = vmatprep.subr.bf16.mxu0 %v1030_v0  ;;  %v435_v7 = vld [vmem:[%s1321_s4 + $0x20] sm:$0xff]  ;;  %v437_v10 = vld [vmem:[%s1321_s4 + $0x30] sm:$0xff] }
  0x43   :  { %848 = vmatpush3.bf16.msra.mxu1 %v847_v14  ;;  %v312_v14 = vld [vmem:[%s1320_s3 + $0x38] sm:$0xff] }
  0x44   :  { %849 = vmatprep.subr.bf16.mxu1 %v1030_v0  ;;  %v874_v15 = vpack.c.bf16 %v312_v14, %v311_v13 }
  0x45   :  { %869 = vmatpush3.bf16.msra.mxu0 %v868_v9  ;;  %v895_v9 = vpack.c.bf16 %v436_v8, %v435_v7 }
  0x46   :  { %870 = vmatprep.subr.bf16.mxu0 %v1030_v0 }
  0x47   :  { %851 = vmatpush3.bf16.msra.mxu1 %v850_v17  ;;  %v314_v17 = vld [vmem:[%s1320_s3 + $0x48] sm:$0xff] }
  0x48   :  { %852 = vmatprep.subr.bf16.mxu1 %v1030_v0  ;;  %v877_v18 = vpack.c.bf16 %v314_v17, %v313_v16 }
  0x49   :  { %872 = vmatpush3.bf16.msra.mxu0 %v871_v12  ;;  %v898_v12 = vpack.c.bf16 %v438_v11, %v437_v10 }
  0x4a   :  { %873 = vmatprep.subr.bf16.mxu0 %v1030_v0 }
  0x4b   :  { %854 = vmatpush3.bf16.msra.mxu1 %v853_v20  ;;  %v316_v20 = vld [vmem:[%s1320_s3 + $0x58] sm:$0xff] }
  0x4c   :  { %855 = vmatprep.subr.bf16.mxu1 %v1030_v0  ;;  %v880_v21 = vpack.c.bf16 %v316_v20, %v315_v19 }
  0x4d   :  { %875 = vmatpush3.bf16.msra.mxu0 %v874_v15 }
  0x4e   :  { %876 = vmatprep.subr.bf16.mxu0 %v1030_v0 }
  0x4f   :  { %857 = vmatpush3.bf16.msra.mxu1 %v856_v23  ;;  %v318_v23 = vld [vmem:[%s1320_s3 + $0x68] sm:$0xff] }
  0x50   :  { %858 = vmatprep.subr.bf16.mxu1 %v1030_v0  ;;  %v883_v24 = vpack.c.bf16 %v318_v23, %v317_v22 }
  0x51   :  { %878 = vmatpush3.bf16.msra.mxu0 %v877_v18 }
  0x52   :  { %879 = vmatprep.subr.bf16.mxu0 %v1030_v0 }
  0x53   :  { %860 = vmatpush3.bf16.msra.mxu1 %v859_v26  ;;  %v320_v26 = vld [vmem:[%s1320_s3 + $0x78] sm:$0xff] }
  0x54   :  { %861 = vmatprep.subr.bf16.mxu1 %v1030_v0  ;;  %v886_v27 = vpack.c.bf16 %v320_v26, %v319_v25 }
  0x55   :  { %881 = vmatpush3.bf16.msra.mxu0 %v880_v21 }
  0x56   :  { %882 = vmatprep.subr.bf16.mxu0 %v1030_v0 }
  0x57   :  { %863 = vmatpush3.bf16.msra.mxu1 %v862_v29 }
  0x58   :  { %888 = vmatprep.subr.bf16.mxu1 %v1030_v0 }
  0x59   :  { %884 = vmatpush3.bf16.msra.mxu0 %v883_v24 }
  0x5a   :  { %885 = vmatprep.subr.bf16.mxu0 %v1030_v0 }
  0x5d   :  { %887 = vmatpush3.bf16.msra.mxu0 %v886_v27 }
  0x5e   :  { %900 = vmatprep.subr.bf16.mxu0 %v1030_v0 }
 0x110   :  { %v141_v30 = vpop.f32.mrb[0].mxu0 }
 0x111   :  { %v145_v31 = vrot.slane %v141_v30, 4  ;;  %v152_v32 = vmul.f32 %v141_v30, %v141_v30  ;;  %v728_v33 = vpop.f32.mrb[1].mxu0 }
 0x113   :  { %v146_v34 = vadd.f32 %v145_v31, %v141_v30  ;;  %v153_v35 = vrot.slane %v152_v32, 4 }
 0x115   :  { %v147_v36 = vrot.slane %v146_v34, 2  ;;  %v154_v37 = vadd.f32 %v153_v35, %v152_v32 }
 0x117   :  { %v148_v38 = vadd.f32 %v147_v36, %v146_v34  ;;  %v155_v39 = vrot.slane %v154_v37, 2 }
 0x119   :  { %v149_v40 = vrot.slane %v148_v38, 1  ;;  %v156_v41 = vadd.f32 %v155_v39, %v154_v37 }
 0x11b   :  { %v150_v42 = vadd.f32 %v149_v40, %v148_v38  ;;  %v157_v43 = vrot.slane %v156_v41, 1 }
 0x11d   :  { %v151_v44 = vmul.f32 0.125, %v150_v42  ;;  %v158_v45 = vadd.f32 %v157_v43, %v156_v41 }
 0x11f   :  { %v159_v46 = vmul.f32 0.125, %v158_v45  ;;  %v160_v47 = vmul.f32 %v151_v44, %v151_v44 }
 0x121   :  { %v161_v48 = vsub.f32 %v159_v46, %v160_v47 }
 0x123   :  { %v162_v49 = vadd.f32 1e-05, %v161_v48 }
 0x125   :  { %921 = vrsqrt.f32 %v162_v49 }
 0x12f   :  { %v922_v53 = vpop.eup %921 }
 0x130   :  { %v164_v54 = vmul.f32 %v922_v53, %v1187_v52  ;;  %v295_v53 = vsub.s32 1, %v1182_v51 }
 0x132   :  { %v165_v56 = vmul.f32 %v164_v54, %v151_v44  ;;  %v173_v57 = vrot.slane %v164_v54, %v172_v55 }
 0x134   :  { %v167_v58 = vrot.slane %v165_v56, 4  ;;  %v174_v61 = vmul.f32 %v173_v57, %v141_v30  ;;  %v300_v57 = vsub.s32 5, %v1182_v51 }
 0x136   :  { %v169_v60 = vsub.f32 %v1187_v52, %v167_v58 }
 0x138   :  { %v178_v62 = vrot.slane %v169_v60, %v177_v59 }
 0x13a   :  { %v179_v63 = vadd.f32 %v178_v62, %v174_v61 }
 0x13c   :  { %v180_v2 = vmul.f32 0.01, %v179_v63 }
 0x13e   :  { %v181_v3 = vmax.f32 %v179_v63, %v180_v2  ;;  %v431_v2 = vld [vmem:[%s1321_s4] sm:$0xff] }
 0x140   :  { %762 = vmatmul.mubr.f32.vlgmr.msra.gmra.mrb[0].mxu1 %v181_v3  ;;  %v432_v3 = vld [vmem:[%s1321_s4 + $0x8] sm:$0xff] }
 0x141   :  { %815 = vmatprep.mubr.msk.f32.mxu1 %vm1031_vm0, %v1032_v1  ;;  %v889_v4 = vpack.c.bf16 %v432_v3, %v431_v2 }
 0x143   :  { %890 = vmatpush3.bf16.msra.mxu1 %v889_v4 }
 0x144   :  { %891 = vmatprep.subr.bf16.mxu1 %v1030_v0 }
 0x213   :  { %v264_v28 = vpop.f32.mrb[0].mxu1 }
 0x214   :  { %v268_v29 = vrot.slane %v264_v28, 4  ;;  %v275_v30 = vmul.f32 %v264_v28, %v264_v28  ;;  %v763_v31 = vpop.f32.mrb[1].mxu1 }
 0x216   :  { %v269_v32 = vadd.f32 %v268_v29, %v264_v28  ;;  %v276_v33 = vrot.slane %v275_v30, 4 }
 0x218   :  { %v270_v34 = vrot.slane %v269_v32, 2  ;;  %v277_v35 = vadd.f32 %v276_v33, %v275_v30 }
 0x21a   :  { %v271_v36 = vadd.f32 %v270_v34, %v269_v32  ;;  %v278_v37 = vrot.slane %v277_v35, 2 }
 0x21c   :  { %v272_v38 = vrot.slane %v271_v36, 1  ;;  %v279_v39 = vadd.f32 %v278_v37, %v277_v35  ;;  %v421_v37 = vsub.s32 2, %v1182_v51 }
 0x21e   :  { %v273_v40 = vadd.f32 %v272_v38, %v271_v36  ;;  %v280_v41 = vrot.slane %v279_v39, 1 }
 0x220   :  { %v274_v42 = vmul.f32 0.125, %v273_v40  ;;  %v281_v43 = vadd.f32 %v280_v41, %v279_v39  ;;  %v426_v41 = vsub.s32 6, %v1182_v51 }
 0x222   :  { %v282_v44 = vmul.f32 0.125, %v281_v43  ;;  %v283_v45 = vmul.f32 %v274_v42, %v274_v42 }
 0x224   :  { %v284_v46 = vsub.f32 %v282_v44, %v283_v45 }
 0x226   :  { %v285_v47 = vadd.f32 1e-05, %v284_v46 }
 0x228   :  { %923 = vrsqrt.f32 %v285_v47 }
 0x232   :  { %v924_v48 = vpop.eup %923 }
 0x233   :  { %v287_v49 = vmul.f32 %v924_v48, %v1187_v52  ;;  %v551_v48 = vld [vmem:[#allocation7] sm:$0xff] }
 0x235   :  { %v288_v54 = vmul.f32 %v287_v49, %v274_v42  ;;  %v296_v56 = vrot.slane %v287_v49, %v295_v53  ;;  %v552_v49 = vld [vmem:[#allocation7 + $0x8] sm:$0xff] }
 0x236   :  { %v901_v53 = vpack.c.bf16 %v552_v49, %v551_v48 }
 0x237   :  { %v290_v55 = vrot.slane %v288_v54, 4  ;;  %v297_v59 = vmul.f32 %v296_v56, %v264_v28  ;;  %v553_v54 = vld [vmem:[#allocation7 + $0x10] sm:$0xff] }
 0x239   :  { %v292_v58 = vsub.f32 %v1187_v52, %v290_v55  ;;  %v554_v55 = vld [vmem:[#allocation7 + $0x18] sm:$0xff] }
 0x23a   :  { %v904_v56 = vpack.c.bf16 %v554_v55, %v553_v54 }
 0x23b   :  { %v301_v60 = vrot.slane %v292_v58, %v300_v57  ;;  %v555_v57 = vld [vmem:[#allocation7 + $0x20] sm:$0xff]  ;;  %v556_v58 = vld [vmem:[#allocation7 + $0x28] sm:$0xff] }
 0x23d   :  { %v302_v61 = vadd.f32 %v301_v60, %v297_v59  ;;  %v907_v59 = vpack.c.bf16 %v556_v58, %v555_v57  ;;  %v557_v60 = vld [vmem:[#allocation7 + $0x30] sm:$0xff] }
 0x23f   :  { %v303_v62 = vmul.f32 0.01, %v302_v61 }
 0x241   :  { %v304_v63 = vmax.f32 %v302_v61, %v303_v62  ;;  %v558_v61 = vld [vmem:[#allocation7 + $0x38] sm:$0xff] }
 0x242   :  { %v910_v62 = vpack.c.bf16 %v558_v61, %v557_v60 }
 0x243   :  { %797 = vmatmul.mubr.f32.vlgmr.msra.gmra.mrb[2].mxu0 %v304_v63 }
 0x244   :  { %834 = vmatprep.mubr.msk.f32.mxu0 %vm1031_vm0, %v1032_v1  ;;  %v434_v1 = vld [vmem:[%s1321_s4 + $0x18] sm:$0xff]  ;;  %902 = vmatpush3.bf16.msra.mxu0 %v901_v53 }
 0x245   :  { %v892_v6 = vpack.c.bf16 %v434_v1, %v433_v5  ;;  %903 = vmatprep.subr.bf16.mxu0 %v1030_v0 }
 0x247   :  { %893 = vmatpush3.bf16.msra.mxu1 %v892_v6 }
 0x248   :  { %894 = vmatprep.subr.bf16.mxu1 %v1030_v0  ;;  %905 = vmatpush3.bf16.msra.mxu0 %v904_v56 }
 0x249   :  { %906 = vmatprep.subr.bf16.mxu0 %v1030_v0 }
 0x24b   :  { %896 = vmatpush3.bf16.msra.mxu1 %v895_v9 }
 0x24c   :  { %897 = vmatprep.subr.bf16.mxu1 %v1030_v0  ;;  %908 = vmatpush3.bf16.msra.mxu0 %v907_v59 }
 0x24d   :  { %909 = vmatprep.subr.bf16.mxu0 %v1030_v0 }
 0x24f   :  { %899 = vmatpush3.bf16.msra.mxu1 %v898_v12 }
 0x250   :  { %911 = vmatpush3.bf16.msra.mxu0 %v910_v62 }
 0x316   :  { %v387_v13 = vpop.f32.mrb[2].mxu0 }
 0x317   :  { %v392_v14 = vsel %vm391_vm2, %v387_v13, 0.0  ;;  %v400_v15 = vmul.f32 %v387_v13, %v387_v13  ;;  %v798_v16 = vpop.f32.mrb[3].mxu0 }
 0x318   :  { %v393_v17 = vrot.slane %v392_v14, 4 }
 0x319   :  { %v401_v18 = vsel %vm391_vm2, %v400_v15, 0.0 }
 0x31a   :  { %v394_v19 = vadd.f32 %v393_v17, %v392_v14  ;;  %v402_v20 = vrot.slane %v401_v18, 4 }
 0x31c   :  { %v395_v21 = vrot.slane %v394_v19, 2  ;;  %v403_v22 = vadd.f32 %v402_v20, %v401_v18 }
 0x31e   :  { %v396_v23 = vadd.f32 %v395_v21, %v394_v19  ;;  %v404_v24 = vrot.slane %v403_v22, 2 }
 0x320   :  { %v397_v25 = vrot.slane %v396_v23, 1  ;;  %v405_v26 = vadd.f32 %v404_v24, %v403_v22 }
 0x322   :  { %v398_v27 = vadd.f32 %v397_v25, %v396_v23  ;;  %v406_v28 = vrot.slane %v405_v26, 1  ;;  %v541_v23 = vsub.s32 3, %v1182_v51 }
 0x324   :  { %v399_v29 = vmul.f32 0.125, %v398_v27  ;;  %v407_v30 = vadd.f32 %v406_v28, %v405_v26  ;;  %v546_v27 = vsub.s32 7, %v1182_v51 }
 0x326   :  { %v408_v31 = vmul.f32 0.125, %v407_v30  ;;  %v409_v32 = vmul.f32 %v399_v29, %v399_v29 }
 0x328   :  { %v410_v33 = vsub.f32 %v408_v31, %v409_v32 }
 0x32a   :  { %v411_v34 = vadd.f32 1e-05, %v410_v33 }
 0x32c   :  { %925 = vrsqrt.f32 %v411_v34  ;;  %v665_v34 = vld [vmem:[%s1323_s6 + $0x8] ss:$0 sm:$0xff] }
 0x336   :  { %v926_v35 = vpop.eup %925 }
 0x337   :  { %v413_v36 = vmul.f32 %v926_v35, %v1187_v52  ;;  %v637_v35 = vand.u32 127, %v170_v50 }
 0x339   :  { %v414_v38 = vmul.f32 %v413_v36, %v399_v29  ;;  %v422_v40 = vrot.slane %v413_v36, %v421_v37  ;;  %vm638_vm3 = vcmp.eq.s32.totalorder %v637_v35, 0 }
 0x33b   :  { %v416_v39 = vrot.slane %v414_v38, 4  ;;  %v423_v43 = vmul.f32 %v422_v40, %v387_v13 }
 0x33d   :  { %v418_v42 = vsub.f32 %v1187_v52, %v416_v39 }
 0x33f   :  { %v427_v44 = vrot.slane %v418_v42, %v426_v41 }
 0x341   :  { %v428_v45 = vadd.f32 %v427_v44, %v423_v43 }
 0x343   :  { %v429_v46 = vmul.f32 0.01, %v428_v45 }
 0x345   :  { %v430_v47 = vmax.f32 %v428_v45, %v429_v46 }
 0x347   :  { %816 = vmatmul.mubr.msk.f32.vlgmr.msra.gmra.mrb[2].mxu1 %vm391_vm2, %v430_v47 }
 0x41a   :  { %v508_v63 = vpop.f32.mrb[2].mxu1 }
 0x41b   :  { %v512_v2 = vsel %vm391_vm2, %v508_v63, 0.0  ;;  %v520_v3 = vmul.f32 %v508_v63, %v508_v63  ;;  %v817_v4 = vpop.f32.mrb[3].mxu1 }
 0x41c   :  { %v513_v5 = vrot.slane %v512_v2, 4 }
 0x41d   :  { %v521_v1 = vsel %vm391_vm2, %v520_v3, 0.0 }
 0x41e   :  { %v514_v6 = vadd.f32 %v513_v5, %v512_v2  ;;  %v522_v7 = vrot.slane %v521_v1, 4 }
 0x420   :  { %v515_v8 = vrot.slane %v514_v6, 2  ;;  %v523_v9 = vadd.f32 %v522_v7, %v521_v1 }
 0x422   :  { %v516_v10 = vadd.f32 %v515_v8, %v514_v6  ;;  %v524_v11 = vrot.slane %v523_v9, 2 }
 0x424   :  { %v517_v12 = vrot.slane %v516_v10, 1  ;;  %v525_v0 = vadd.f32 %v524_v11, %v523_v9 }
 0x426   :  { %v518_v13 = vadd.f32 %v517_v12, %v516_v10  ;;  %v526_v14 = vrot.slane %v525_v0, 1 }
 0x428   :  { %v519_v15 = vmul.f32 0.125, %v518_v13  ;;  %v527_v16 = vadd.f32 %v526_v14, %v525_v0 }
 0x42a   :  { %v528_v17 = vmul.f32 0.125, %v527_v16  ;;  %v529_v18 = vmul.f32 %v519_v15, %v519_v15 }
 0x42c   :  { %v530_v19 = vsub.f32 %v528_v17, %v529_v18 }
 0x42e   :  { %v531_v20 = vadd.f32 1e-05, %v530_v19 }
 0x430   :  { %927 = vrsqrt.f32 %v531_v20 }
 0x43a   :  { %v928_v21 = vpop.eup %927 }
 0x43b   :  { %v533_v22 = vmul.f32 %v928_v21, %v1187_v52 }
 0x43d   :  { %v534_v24 = vmul.f32 %v533_v22, %v519_v15  ;;  %v542_v26 = vrot.slane %v533_v22, %v541_v23 }
 0x43f   :  { %v536_v25 = vrot.slane %v534_v24, 4  ;;  %v543_v29 = vmul.f32 %v542_v26, %v508_v63 }
 0x441   :  { %v538_v28 = vsub.f32 %v1187_v52, %v536_v25 }
 0x443   :  { %v547_v30 = vrot.slane %v538_v28, %v546_v27 }
 0x445   :  { %v548_v31 = vadd.f32 %v547_v30, %v543_v29 }
 0x447   :  { %v549_v32 = vmul.f32 0.01, %v548_v31 }
 0x449   :  { %v550_v33 = vmax.f32 %v548_v31, %v549_v32 }
 0x44b   :  { %835 = vmatmul.mubr.msk.f32.vlgmr.msra.gmra.mrb[4].mxu0 %vm391_vm2, %v550_v33 }
 0x51e   :  { %v632_v36 = vpop.f32.mrb[4].mxu0 }
 0x51f   :  { %v633_v37 = vadd.f32 %v665_v34, %v632_v36  ;;  %v836_v38 = vpop.f32.mrb[5].mxu0 }
 0x521   :  { %v639_v51 = vmul.f32 0.5, %v633_v37 }
 0x523   :  { %v640_v39 = vsel %vm638_vm3, %v633_v37, %v639_v51 }
 0x524   :  { %929 = vtanh.f32 %v640_v39 }
 0x52e   :  { %v930_v52 = vpop.eup %929 }
 0x52f   :  { %v643_v40 = vmul.f32 0.25, %v930_v52  ;;  %v642_v41 = vmul.f32 1.5, %v930_v52 }
 0x531   :  { %v644_v42 = vadd.f32 0.25, %v643_v40 }
 0x533   :  { %v645_v43 = vsel %vm638_vm3, %v642_v41, %v644_v42 }
 0x534   :  { %646 = vst [vmem:[#allocation8] sm:$0xff] %v645_v43 }
 0x535   :  { %1008 = shalt.err (!%p1005_p0)
}
 0x536   :  { %s1009_s2 = scalar_lea.hbm %s1324_s7, 128 }
 0x537   :  { %p1010_p1 = scmp.ne.s32.totalorder %s1324_s7, %s1009_s2  ;;  %p1013_p2 = scmp.lt.u32.totalorder %s1009_s2, %s1324_s7 }
 0x539   :  { %p1015_p3 = pnand %p1013_p2, %p1010_p1 }
 0x53b   :  { %1018 = shalt.err (!%p1015_p3)
}
 0x53c   :  { %656 = dma.vmem_to_hbm [thread:$0]  %s654_s16, 128, %s1324_s7, [#allocation4]  }
 0x53d   :  { %1023 = dma.done.wait [#allocation4], 128  }
 0x53e   :  { %1024 = vsyncadd [#allocation4], 4294967168 }
 0x53f   :  { %660 = vsyncpa [#allocation3], 1 }
 0x540   :  { %661 = vsyncpa [#allocation6], 1 }
 0x541   :  { %662 = vsyncpa [#allocation4], 1 }

</bundles_post_ra>
